<compile_context>
chip_gen: v7x
topology: tpu7x:2x2x1
jax: 0.10.0
libtpu: 0.0.40
codegen_flags: <defaults>
</compile_context>

<pallas_src>
import functools

import jax
import jax.numpy as jnp
from jax.experimental import pallas as pl
from jax.experimental.pallas import tpu as pltpu

_LANE = 128
_SUBLANE = 8


def _round_up(x, m):
    return ((x + m - 1) // m) * m


def _joints_mse_kernel(*refs, use_target_weight):
    if use_target_weight:
        pred_ref, gt_ref, w_ref, out_ref = refs
    else:
        pred_ref, gt_ref, out_ref = refs

    i = pl.program_id(1)

    # Output block stays resident across the reduction axis; init at i == 0.
    @pl.when(i == 0)
    def _():
        out_ref[...] = jnp.zeros_like(out_ref)

    p = pred_ref[...].astype(jnp.float32)
    g = gt_ref[...].astype(jnp.float32)
    d = p - g
    if use_target_weight:
        d = d * w_ref[...].astype(jnp.float32)  # (tile_rows, 1) broadcasts on lanes
    d2 = d * d

    tile_rows, hw_pad = d2.shape
    # Group rows by 8 and sum over the group axis: pure element-wise VPU adds
    # into the vreg-shaped (8, HW_pad) accumulator. No per-step XLU reduce.
    out_ref[...] += jnp.sum(d2.reshape(tile_rows // _SUBLANE, _SUBLANE, hw_pad), axis=0)


def joints_mse_loss(output, target, target_weight,
                    use_target_weight=False, loss_weight=1.0):
    """Pallas equivalent of JointsMSELoss.forward.

    output, target: [B, K, H, W]
    target_weight:  [B, K, 1]
    Returns a scalar float32 loss.
    """
    B, K, H, W = output.shape
    HW = H * W
    R = B * K

    hw_pad = _round_up(HW, _LANE)
    itemsize = output.dtype.itemsize

    # Tile sizing: ~4 MiB per input block, multiple of 8 rows, capped so the
    # double-buffered footprint stays well inside every generation's VMEM.
    target_block_bytes = 4 * 1024 * 1024
    tile_rows = max(_SUBLANE,
                    (target_block_bytes // (hw_pad * itemsize)) // _SUBLANE * _SUBLANE)
    tile_rows = min(tile_rows, 2048)
    tile_rows = min(tile_rows, _round_up(R, _SUBLANE))

    total_tiles = (R + tile_rows - 1) // tile_rows
    n_split = 2 if total_tiles >= 2 else 1          # 2 TensorCores on v7x
    total_tiles = _round_up(total_tiles, n_split)
    steps = total_tiles // n_split
    r_pad = total_tiles * tile_rows

    pred2d = jnp.pad(output.reshape(R, HW), ((0, r_pad - R), (0, hw_pad - HW)))
    gt2d = jnp.pad(target.reshape(R, HW), ((0, r_pad - R), (0, hw_pad - HW)))

    row_map = lambda s, i: (s * steps + i, 0)

    in_specs = [
        pl.BlockSpec((tile_rows, hw_pad), row_map),
        pl.BlockSpec((tile_rows, hw_pad), row_map),
    ]
    args = [pred2d, gt2d]
    if use_target_weight:
        w2d = target_weight.reshape(R, 1).astype(jnp.float32)
        w2d = jnp.pad(w2d, ((0, r_pad - R), (0, 0)))
        in_specs.append(pl.BlockSpec((tile_rows, 1), row_map))
        args.append(w2d)

    kernel = functools.partial(_joints_mse_kernel,
                               use_target_weight=use_target_weight)

    bytes_in = (2 * r_pad * hw_pad) * itemsize
    if use_target_weight:
        bytes_in += r_pad * 4
    cost = pl.CostEstimate(flops=3 * r_pad * hw_pad,
                           transcendentals=0,
                           bytes_accessed=bytes_in + n_split * _SUBLANE * hw_pad * 4)

    partials = pl.pallas_call(
        kernel,
        out_shape=jax.ShapeDtypeStruct((n_split * _SUBLANE, hw_pad), jnp.float32),
        grid_spec=pltpu.PrefetchScalarGridSpec(
            num_scalar_prefetch=0,
            grid=(n_split, steps),
            in_specs=in_specs,
            out_specs=pl.BlockSpec((_SUBLANE, hw_pad), lambda s, i: (s, 0)),
        ),
        compiler_params=pltpu.CompilerParams(
            dimension_semantics=("parallel", "arbitrary"),
            vmem_limit_bytes=48 * 1024 * 1024),
        cost_estimate=cost,
    )(*args)

    # loss = loss_weight * (1/K) * sum_k mean_{B,HW}(sq_diff_k)
    #      = loss_weight * sum_all(sq_diff) / (B * HW * K)
    scale = float(loss_weight) / float(B * HW * K)
    return jnp.sum(partials) * scale


def joints_mse_loss_ref(output, target, target_weight,
                        use_target_weight=False, loss_weight=1.0):
    """Pure-JAX reference mirroring the PyTorch loop exactly."""
    B, K, H, W = output.shape
    pred = output.reshape(B, K, -1).astype(jnp.float32)
    gt = target.reshape(B, K, -1).astype(jnp.float32)
    loss = 0.0
    for idx in range(K):
        hp = pred[:, idx]
        hg = gt[:, idx]
        if use_target_weight:
            w = target_weight[:, idx].astype(jnp.float32)  # [B, 1]
            loss += jnp.mean((hp * w - hg * w) ** 2)
        else:
            loss += jnp.mean((hp - hg) ** 2)
    return loss / K * loss_weight


if __name__ == "__main__":
    B, K, H, W = 2, 4, 16, 16
    key = jax.random.PRNGKey(0)
    k1, k2, k3 = jax.random.split(key, 3)
    output = jax.random.normal(k1, (B, K, H, W), dtype=jnp.float32)
    target = jax.random.normal(k2, (B, K, H, W), dtype=jnp.float32)
    target_weight = jax.random.uniform(k3, (B, K, 1), dtype=jnp.float32)

    ok = True
    for use_tw in (False, True):
        loss = joints_mse_loss(output, target, target_weight,
                               use_target_weight=use_tw, loss_weight=1.0)
        jax.block_until_ready(loss)
        ref = joints_mse_loss_ref(output, target, target_weight,
                                  use_target_weight=use_tw, loss_weight=1.0)
        if not jnp.allclose(loss, ref, rtol=1e-5, atol=1e-6):
            ok = False
            print("MISMATCH", use_tw, float(loss), float(ref))

    if ok:
        print("KERNEL_OK")
</pallas_src>

<mosaic_0001>
module attributes {stable_mosaic.version = 11 : i64} {
  func.func @_joints_mse_kernel(%arg0: i32, %arg1: i32, %arg2: memref<8x256xf32, #tpu.memory_space<vmem>>, %arg3: memref<8x256xf32, #tpu.memory_space<vmem>>, %arg4: memref<8x256xf32, #tpu.memory_space<vmem>>) attributes {dimension_semantics = [#tpu.dimension_semantics<parallel>, #tpu.dimension_semantics<arbitrary>], iteration_bounds = array<i64: 1, 1>, scalar_prefetch = 0 : i64, scratch_operands = 0 : i64, tpu.core_type = #tpu.core_type<tc>, window_params = [{transform_indices = @transform_0, window_bounds = array<i64: 8, 256>}, {transform_indices = @transform_1, window_bounds = array<i64: 8, 256>}, {transform_indices = @transform_2, window_bounds = array<i64: 8, 256>}]} {
    %c0_i32 = arith.constant 0 : i32
    %0 = arith.cmpi eq, %arg1, %c0_i32 : i32
    %1 = arith.extui %0 : i1 to i32
    %c0_i32_0 = arith.constant 0 : i32
    %2 = arith.cmpi ne, %1, %c0_i32_0 : i32
    scf.if %2 {
      %cst_8 = arith.constant 0.000000e+00 : f32
      %12 = vector.broadcast %cst_8 : f32 to vector<8x256xf32>
      %c0_9 = arith.constant 0 : index
      %c0_10 = arith.constant 0 : index
      %13 = vector.load %arg4[%c0_9, %c0_10] : memref<8x256xf32, #tpu.memory_space<vmem>>, vector<8x256xf32>
      tpu.vector_store %arg4[%c0_9, %c0_10], %12 {strides = array<i32>} : memref<8x256xf32, #tpu.memory_space<vmem>>, vector<8x256xf32>,
    } else {
    }
    %c0 = arith.constant 0 : index
    %c0_1 = arith.constant 0 : index
    %3 = vector.load %arg2[%c0, %c0_1] : memref<8x256xf32, #tpu.memory_space<vmem>>, vector<8x256xf32>
    %c0_2 = arith.constant 0 : index
    %c0_3 = arith.constant 0 : index
    %4 = vector.load %arg3[%c0_2, %c0_3] : memref<8x256xf32, #tpu.memory_space<vmem>>, vector<8x256xf32>
    %5 = arith.subf %3, %4 : vector<8x256xf32>
    %6 = arith.mulf %5, %5 : vector<8x256xf32>
    %c0_4 = arith.constant 0 : index
    %c0_5 = arith.constant 0 : index
    %7 = vector.load %arg4[%c0_4, %c0_5] : memref<8x256xf32, #tpu.memory_space<vmem>>, vector<8x256xf32>
    %8 = vector.shape_cast %6 : vector<8x256xf32> to vector<1x8x256xf32>
    %cst = arith.constant dense<0.000000e+00> : vector<8x256xf32>
    %9 = vector.multi_reduction <add>, %8, %cst [0] : vector<1x8x256xf32> to vector<8x256xf32>
    %10 = arith.addf %7, %9 : vector<8x256xf32>
    %c0_6 = arith.constant 0 : index
    %c0_7 = arith.constant 0 : index
    %11 = vector.load %arg4[%c0_6, %c0_7] : memref<8x256xf32, #tpu.memory_space<vmem>>, vector<8x256xf32>
    tpu.vector_store %arg4[%c0_6, %c0_7], %10 {strides = array<i32>} : memref<8x256xf32, #tpu.memory_space<vmem>>, vector<8x256xf32>,
    return
  }
  func.func @transform_0(%arg0: i32, %arg1: i32) -> (i32, i32) {
    %c1_i32 = arith.constant 1 : i32
    %0 = arith.muli %arg0, %c1_i32 : i32
    %1 = arith.addi %0, %arg1 : i32
    %c0_i32 = arith.constant 0 : i32
    %c0_i32_0 = arith.constant 0 : i32
    return %1, %c0_i32 : i32, i32
  }
  func.func @transform_1(%arg0: i32, %arg1: i32) -> (i32, i32) {
    %c1_i32 = arith.constant 1 : i32
    %0 = arith.muli %arg0, %c1_i32 : i32
    %1 = arith.addi %0, %arg1 : i32
    %c0_i32 = arith.constant 0 : i32
    %c0_i32_0 = arith.constant 0 : i32
    return %1, %c0_i32 : i32, i32
  }
  func.func @transform_2(%arg0: i32, %arg1: i32) -> (i32, i32) {
    %c0_i32 = arith.constant 0 : i32
    %c0_i32_0 = arith.constant 0 : i32
    return %arg0, %c0_i32 : i32, i32
  }
}

</mosaic_0001>

<bundles_post_ra>
// kernel: tpu_custom_call.1
= control target key start
LH: loop header
LB: loop body
LE: loop exit
PB: predicated region body
PF: predicated region fallthrough
CT: control target
= control target key end

     0   :  { %7 = vsyncpa [#allocation3], 0  ;;  %s214_s0 = inlined_call_operand.hbm [shape: f32[8,256], index: 0, kind: input, shape index: {}]   ;;  %s215_s1 = inlined_call_operand.hbm [shape: f32[8,256], index: 1, kind: input, shape index: {}]   ;;  %s216_s2 = inlined_call_operand.hbm [shape: f32[8,256], index: 2, kind: output, shape index: {}]  }
   0x1   :  { %8 = vsyncpa [#allocation6], 0 }
   0x2   :  { %9 = vsyncpa [#allocation4], 0  ;;  %s160_s9 = smov [#allocation2]   ;;  %s161_s11 = smov [#allocation5]  }
   0x3   :  { %s20_s10 = sshll.u32 %s160_s9, 4  ;;  %s34_s12 = sshll.u32 %s161_s11, 4  ;;  %s21_s10 = int_to_ptr.vmem [resolvable:$true] %s20_s10  ;;  %s35_s12 = int_to_ptr.vmem [resolvable:$true] %s34_s12 }
   0x4   :  { %s88_s15 = scalar_lea.hbm %s214_s0, 256 }
   0x5   :  { %p89_p0 = scmp.ne.s32.totalorder %s214_s0, %s88_s15  ;;  %p92_p1 = scmp.lt.u32.totalorder %s88_s15, %s214_s0 }
   0x7   :  { %p94_p2 = pnand %p92_p1, %p89_p0 }
   0x9   :  { %97 = shalt.err (!%p94_p2)
}
   0xa   :  { %s98_s20 = scalar_lea.vmem %s21_s10, 256  ;;  %p103_p4 = scmp.lt.s32.totalorder %s21_s10, %s21_s10 }
   0xb   :  { %p99_p3 = scmp.ne.s32.totalorder %s21_s10, %s98_s20  ;;  %p104_p5 = scmp.lt.s32.totalorder %s98_s20, %s98_s20 }
   0xd   :  { %p105_p6 = por %p104_p5, %p103_p4 }
   0xf   :  { %p106_p7 = pnand %p105_p6, %p99_p3 }
  0x11   :  { %109 = shalt.err (!%p106_p7)
}
  0x12   :  { %23 = dma.hbm_to_vmem [thread:$0]  %s214_s0, 256, %s21_s10, [#allocation3]  }
  0x13   :  { %s110_s25 = scalar_lea.hbm %s215_s1, 256 }
  0x14   :  { %p111_p8 = scmp.ne.s32.totalorder %s215_s1, %s110_s25  ;;  %p114_p9 = scmp.lt.u32.totalorder %s110_s25, %s215_s1 }
  0x16   :  { %p116_p10 = pnand %p114_p9, %p111_p8 }
  0x18   :  { %119 = shalt.err (!%p116_p10)
}
  0x19   :  { %s120_s30 = scalar_lea.vmem %s35_s12, 256  ;;  %p125_p12 = scmp.lt.s32.totalorder %s35_s12, %s35_s12 }
  0x1a   :  { %p121_p11 = scmp.ne.s32.totalorder %s35_s12, %s120_s30  ;;  %p126_p13 = scmp.lt.s32.totalorder %s120_s30, %s120_s30 }
  0x1c   :  { %p127_p0 = por %p126_p13, %p125_p12 }
  0x1e   :  { %p128_p1 = pnand %p127_p0, %p121_p11 }
  0x20   :  { %131 = shalt.err (!%p128_p1)
}
  0x21   :  { %37 = dma.hbm_to_vmem [thread:$0]  %s215_s1, 256, %s35_s12, [#allocation6]  }
  0x22   :  { %154 = dma.done.wait [#allocation3], 256  }
  0x23   :  { %155 = vsyncadd [#allocation3], 4294967040 }
  0x24   :  { %156 = dma.done.wait [#allocation6], 256  }
  0x25   :  { %157 = vsyncadd [#allocation6], 4294967040  ;;  %v52_v0 = vld [vmem:[#allocation2] sm:$0xff]  ;;  %v54_v1 = vld [vmem:[#allocation5] sm:$0xff]  ;;  %s162_s4 = smov [#allocation7]  }
  0x26   :  { %v53_v2 = vld [vmem:[#allocation2 + $0x8] sm:$0xff]  ;;  %v56_v3 = vsub.f32 %v52_v0, %v54_v1  ;;  %v55_v4 = vld [vmem:[#allocation5 + $0x8] sm:$0xff]  ;;  %s74_s5 = sshll.u32 %s162_s4, 4  ;;  %s75_s5 = int_to_ptr.vmem [resolvable:$true] %s74_s5 }
  0x27   :  { %v57_v5 = vsub.f32 %v53_v2, %v55_v4  ;;  %s132_s6 = scalar_lea.vmem %s75_s5, 256  ;;  %p137_p3 = scmp.lt.s32.totalorder %s75_s5, %s75_s5 }
  0x28   :  { %v58_v6 = vmul.f32 %v56_v3, %v56_v3  ;;  %p133_p2 = scmp.ne.s32.totalorder %s75_s5, %s132_s6  ;;  %p138_p4 = scmp.lt.s32.totalorder %s132_s6, %s132_s6 }
  0x29   :  { %v59_v7 = vmul.f32 %v57_v5, %v57_v5 }
  0x2a   :  { %66 = vst [vmem:[#allocation7] sm:$0xff] %v58_v6  ;;  %p139_p5 = por %p138_p4, %p137_p3 }
  0x2b   :  { %67 = vst [vmem:[#allocation7 + $0x8] sm:$0xff] %v59_v7 }
  0x2c   :  { %p140_p6 = pnand %p139_p5, %p133_p2 }
  0x2e   :  { %143 = shalt.err (!%p140_p6)
}
  0x2f   :  { %s144_s8 = scalar_lea.hbm %s216_s2, 256 }
  0x30   :  { %p145_p7 = scmp.ne.s32.totalorder %s216_s2, %s144_s8  ;;  %p148_p8 = scmp.lt.u32.totalorder %s144_s8, %s216_s2 }
  0x32   :  { %p150_p9 = pnand %p148_p8, %p145_p7 }
  0x34   :  { %153 = shalt.err (!%p150_p9)
}
  0x35   :  { %77 = dma.vmem_to_hbm [thread:$0]  %s75_s5, 256, %s216_s2, [#allocation4]  }
  0x36   :  { %158 = dma.done.wait [#allocation4], 256  }
  0x37   :  { %159 = vsyncadd [#allocation4], 4294967040 }
  0x38   :  { %81 = vsyncpa [#allocation3], 1 }
  0x39   :  { %82 = vsyncpa [#allocation6], 1 }
  0x3a   :  { %83 = vsyncpa [#allocation4], 1 }

</bundles_post_ra>
